<compile_context>
chip_gen: v7x
topology: tpu7x:2x2x1
jax: 0.10.0
libtpu: 0.0.40
codegen_flags: <defaults>
</compile_context>

<pallas_src>
import functools

import jax
import jax.numpy as jnp
from jax.experimental import pallas as pl
from jax.experimental.pallas import tpu as pltpu


def rezero_kernel(alpha_ref, x_ref, w_ref, b_ref, o_ref):
    # alpha_ref: SMEM (1,) f32 scalar
    # x_ref:     VMEM (tm, H) f32 tile of X (streamed)
    # w_ref:     VMEM (H, H) bf16 weight (VMEM-resident: constant index_map)
    # b_ref:     VMEM (1, H) f32 bias    (resident)
    # o_ref:     VMEM (tm, H) f32 output tile
    x = x_ref[...]                                        # keep f32 for residual
    y = jnp.dot(x.astype(jnp.bfloat16), w_ref[...],      # bf16 x bf16 -> f32 MXU
                preferred_element_type=jnp.float32)
    y = y + b_ref[...]
    # NOTE: tanh-GELU used as the representative fn (PyTorch nn.GELU default
    # is erf-GELU; fn is arbitrary in ReZero so this is a modeling choice).
    y = jax.nn.gelu(y, approximate=True)
    o_ref[...] = x + alpha_ref[0] * y                     # ReZero residual


def _cdiv(a, b):
    return (a + b - 1) // b


def _round_up(x, m):
    return ((x + m - 1) // m) * m


def _choose_tm(M, tm_max):
    """Row tile: as large as possible (amortize per-grid-step overhead), but
    sized so the grid length is >= 2 and even whenever M allows it, so both
    v7x TensorCores get equal work.  Always a multiple of 8 sublanes."""
    tm_cap = max(8, min(tm_max, _round_up(M, 8)))
    g = _cdiv(M, tm_cap)
    if g == 1 and M > 8:
        g = 2                      # split a single big tile across both TCs
    elif g > 1 and g % 2 == 1:
        g += 1                     # avoid 2:1 imbalance on odd grid lengths
    return max(8, _round_up(_cdiv(M, g), 8))


@functools.partial(jax.jit, static_argnames=("tm_max",))
def rezero_forward(x_bsh, alpha, w_bf16, b, *, tm_max=1024):
    """x_bsh: (B, S, H) f32.  alpha: (1,) f32.
    w_bf16: (H, H) bf16 (cast once at parameter setup, NOT per call).
    b: (H,) f32."""
    B, S, H = x_bsh.shape
    M = B * S
    tm = _choose_tm(M, tm_max)
    grid = (_cdiv(M, tm),)         # partial last block handled by Pallas masking

    x2d = x_bsh.reshape(M, H)
    b2d = b.reshape(1, H)

    out2d = pl.pallas_call(
        rezero_kernel,
        out_shape=jax.ShapeDtypeStruct((M, H), x2d.dtype),
        grid=grid,
        in_specs=[
            pl.BlockSpec(memory_space=pltpu.MemorySpace.SMEM),   # alpha scalar
            pl.BlockSpec((tm, H), lambda i: (i, 0)),             # X (streamed)
            pl.BlockSpec((H, H), lambda i: (0, 0)),              # W (resident)
            pl.BlockSpec((1, H), lambda i: (0, 0)),              # bias (resident)
        ],
        out_specs=pl.BlockSpec((tm, H), lambda i: (i, 0)),
        compiler_params=pltpu.CompilerParams(
            dimension_semantics=("parallel",)),
    )(alpha, x2d, w_bf16, b2d)

    return out2d.reshape(B, S, H)


def rezero_reference(x_bsh, alpha, w, b):
    # Pure-JAX reference (f32 throughout).
    y = jnp.dot(x_bsh, w) + b
    y = jax.nn.gelu(y, approximate=True)
    return x_bsh + alpha[0] * y


if __name__ == "__main__":
    key = jax.random.PRNGKey(0)
    kx, kw, kb, kx2 = jax.random.split(key, 4)

    # --- small shape consistent with the module (B=2, S=8, H=128) ---
    B, S, H = 2, 8, 128
    x = jax.random.normal(kx, (B, S, H), dtype=jnp.float32)
    w = jax.random.normal(kw, (H, H), dtype=jnp.float32) * (1.0 / jnp.sqrt(H))
    b = jax.random.normal(kb, (H,), dtype=jnp.float32) * 0.01

    # Parameter setup: cast W to bf16 ONCE (hoisted out of the jitted forward).
    w_bf16 = w.astype(jnp.bfloat16)

    # alpha initialized to zeros(1), exactly as in the PyTorch module __init__
    alpha0 = jnp.zeros((1,), dtype=jnp.float32)
    out0 = jax.block_until_ready(rezero_forward(x, alpha0, w_bf16, b))
    # with alpha == 0 the output must equal the input (ReZero identity at init)
    assert jnp.allclose(out0, x, atol=1e-6)

    # nonzero alpha: fused fn path actually computed (bf16 MXU -> loose tol)
    alpha1 = jnp.array([0.5], dtype=jnp.float32)
    out1 = jax.block_until_ready(rezero_forward(x, alpha1, w_bf16, b))
    ref1 = rezero_reference(x, alpha1, w, b)
    assert jnp.allclose(out1, ref1, atol=2e-2, rtol=2e-2)

    # --- non-divisible M exercises the masked partial boundary block ---
    B2, S2 = 3, 350                      # M = 1050 -> tm=528, grid=(2,), last
    x_big = jax.random.normal(kx2, (B2, S2, H), dtype=jnp.float32)  # block partial
    out2 = jax.block_until_ready(rezero_forward(x_big, alpha1, w_bf16, b))
    ref2 = rezero_reference(x_big, alpha1, w, b)
    assert out2.shape == (B2, S2, H)
    assert jnp.allclose(out2, ref2, atol=2e-2, rtol=2e-2)

    print("KERNEL_OK")
</pallas_src>

<mosaic_0001>
module attributes {stable_mosaic.version = 11 : i64} {
  func.func @rezero_kernel(%arg0: i32, %arg1: memref<1xf32, #tpu.memory_space<smem>>, %arg2: memref<8x128xf32, #tpu.memory_space<vmem>>, %arg3: memref<128x128xbf16, #tpu.memory_space<vmem>>, %arg4: memref<1x128xf32, #tpu.memory_space<vmem>>, %arg5: memref<8x128xf32, #tpu.memory_space<vmem>>) attributes {dimension_semantics = [#tpu.dimension_semantics<parallel>], iteration_bounds = array<i64: 2>, scalar_prefetch = 0 : i64, scratch_operands = 0 : i64, tpu.core_type = #tpu.core_type<tc>, window_params = [{transform_indices = @transform_0, window_bounds = array<i64: 1>}, {transform_indices = @transform_1, window_bounds = array<i64: 8, 128>}, {pipeline_mode = #tpu.pipeline_mode<synchronous>, transform_indices = @transform_2, window_bounds = array<i64: 128, 128>}, {pipeline_mode = #tpu.pipeline_mode<synchronous>, transform_indices = @transform_3, window_bounds = array<i64: 1, 128>}, {transform_indices = @transform_4, window_bounds = array<i64: 8, 128>}]} {
    %c0 = arith.constant 0 : index
    %c0_0 = arith.constant 0 : index
    %0 = vector.load %arg2[%c0, %c0_0] : memref<8x128xf32, #tpu.memory_space<vmem>>, vector<8x128xf32>
    %1 = arith.truncf %0 : vector<8x128xf32> to vector<8x128xbf16>
    %c0_1 = arith.constant 0 : index
    %c0_2 = arith.constant 0 : index
    %2 = vector.load %arg3[%c0_1, %c0_2] : memref<128x128xbf16, #tpu.memory_space<vmem>>, vector<128x128xbf16>
    %cst = arith.constant dense<0.000000e+00> : vector<8x128xf32>
    %3 = tpu.matmul %1, %2, %cst {dimension_numbers = #tpu.dot_dimension_numbers<[1], [0], [0], [1], [0, 0, 1, 1], [], []>} : vector<8x128xbf16>, vector<128x128xbf16>, vector<8x128xf32> -> vector<8x128xf32>
    %c0_3 = arith.constant 0 : index
    %c0_4 = arith.constant 0 : index
    %4 = vector.load %arg4[%c0_3, %c0_4] : memref<1x128xf32, #tpu.memory_space<vmem>>, vector<1x128xf32>
    %5 = vector.broadcast %4 : vector<1x128xf32> to vector<8x128xf32>
    %6 = arith.addf %3, %5 : vector<8x128xf32>
    %7 = arith.mulf %6, %6 : vector<8x128xf32>
    %8 = arith.mulf %6, %7 : vector<8x128xf32>
    %cst_5 = arith.constant 4.471500e-02 : f32
    %9 = vector.broadcast %cst_5 : f32 to vector<8x128xf32>
    %10 = arith.mulf %9, %8 : vector<8x128xf32>
    %11 = arith.addf %6, %10 : vector<8x128xf32>
    %cst_6 = arith.constant 0.797884583 : f32
    %12 = vector.broadcast %cst_6 : f32 to vector<8x128xf32>
    %13 = arith.mulf %12, %11 : vector<8x128xf32>
    %14 = math.tanh %13 : vector<8x128xf32>
    %cst_7 = arith.constant 1.000000e+00 : f32
    %15 = vector.broadcast %cst_7 : f32 to vector<8x128xf32>
    %16 = arith.addf %15, %14 : vector<8x128xf32>
    %cst_8 = arith.constant 5.000000e-01 : f32
    %17 = vector.broadcast %cst_8 : f32 to vector<8x128xf32>
    %18 = arith.mulf %17, %16 : vector<8x128xf32>
    %19 = arith.mulf %6, %18 : vector<8x128xf32>
    %c0_9 = arith.constant 0 : index
    %20 = memref.load %arg1[%c0_9] : memref<1xf32, #tpu.memory_space<smem>>
    %21 = vector.broadcast %20 : f32 to vector<8x128xf32>
    %22 = arith.mulf %21, %19 : vector<8x128xf32>
    %23 = arith.addf %0, %22 : vector<8x128xf32>
    %c0_10 = arith.constant 0 : index
    %c0_11 = arith.constant 0 : index
    %24 = vector.load %arg5[%c0_10, %c0_11] : memref<8x128xf32, #tpu.memory_space<vmem>>, vector<8x128xf32>
    tpu.vector_store %arg5[%c0_10, %c0_11], %23 {strides = array<i32>} : memref<8x128xf32, #tpu.memory_space<vmem>>, vector<8x128xf32>,
    return
  }
  func.func @transform_0(%arg0: i32) -> i32 {
    %c0_i32 = arith.constant 0 : i32
    %c0_i32_0 = arith.constant 0 : i32
    return %c0_i32 : i32
  }
  func.func @transform_1(%arg0: i32) -> (i32, i32) {
    %c0_i32 = arith.constant 0 : i32
    %c0_i32_0 = arith.constant 0 : i32
    return %arg0, %c0_i32 : i32, i32
  }
  func.func @transform_2(%arg0: i32) -> (i32, i32) {
    %c0_i32 = arith.constant 0 : i32
    %c0_i32_0 = arith.constant 0 : i32
    %c0_i32_1 = arith.constant 0 : i32
    return %c0_i32, %c0_i32_0 : i32, i32
  }
  func.func @transform_3(%arg0: i32) -> (i32, i32) {
    %c0_i32 = arith.constant 0 : i32
    %c0_i32_0 = arith.constant 0 : i32
    %c0_i32_1 = arith.constant 0 : i32
    return %c0_i32, %c0_i32_0 : i32, i32
  }
  func.func @transform_4(%arg0: i32) -> (i32, i32) {
    %c0_i32 = arith.constant 0 : i32
    %c0_i32_0 = arith.constant 0 : i32
    return %arg0, %c0_i32 : i32, i32
  }
}

</mosaic_0001>

<bundles_post_ra>
// kernel: rezero_forward.1
= control target key start
LH: loop header
LB: loop body
LE: loop exit
PB: predicated region body
PF: predicated region fallthrough
CT: control target
= control target key end

     0   :  { %s942_s0 = inlined_call_operand.<no memory space> [shape: f32[1], index: 0, kind: input, shape index: {}]   ;;  %s943_s1 = inlined_call_operand.hbm [shape: f32[16,128], index: 1, kind: input, shape index: {}]   ;;  %s944_s2 = inlined_call_operand.hbm [shape: bf16[128,128], index: 2, kind: input, shape index: {}]   ;;  %s945_s3 = inlined_call_operand.vmem [shape: f32[1,128], index: 3, kind: input, shape index: {}]   ;;  %s946_s4 = inlined_call_operand.hbm [shape: f32[16,128], index: 4, kind: output, shape index: {}]  }
   0x1   :  { %9 = sst [smem:[#allocation2]] %s942_s0 }
   0x2   :  { %10 = vsyncpa [#allocation4], 0 }
   0x3   :  { %12 = vsyncpa [#allocation4 + $0x1], 0 }
   0x4   :  { %13 = vsyncpa [#allocation7], 0 }
   0x5   :  { %14 = vsyncpa [#allocation5], 0 }
   0x6   :  { %16 = vsyncpa [#allocation5 + $0x1], 0  ;;  %s739_s17 = smov 0   ;;  %s741_s18 = smov 0  }
   0x7   :  { %s743_s19 = smov 0   ;;  %s745_s20 = smov 0  }
   0x8 LB: > { %s760_s0 = sadd.s32 4294967295, %s702_s20   ;;  %s451_s21 = sadd.s32 4294967294, %s702_s20   ;;  %s702_s20 = sphi %s745_s20, %s966_s20   ;;  %s698_s19 = sphi %s743_s19, %s965_s19   ;;  %s694_s18 = sphi %s741_s18, %s964_s18   ;;  %s690_s17 = sphi %s739_s17, %s963_s17  }
   0x9   : > { %p63_p0 = scmp.ne.s32.totalorder %s694_s18, %s690_s17  ;;  %p947_p1 = scmp.eq.s32.totalorder %s760_s0, 0 }
   0xa   : > { %p135_p3 = scmp.eq.s32.totalorder %s451_s21, 1  ;;  %p452_p5 = scmp.ge.s32.totalorder %s702_s20, 1 }
   0xb   : > { %p769_p4 = por %p947_p1, %p63_p0  ;;  %p142_p7 = scmp.lt.s32.totalorder %s702_s20, 3 }
   0xc   : > { %p774_p6 = por %p135_p3, %p63_p0  ;;  %s704_s25 = smov [#allocation6]  }
   0xd   : > { %s950_s22 = scalar_select %p769_p4, 1, 0 }
   0xe   : > { %s951_s23 = scalar_select %p774_p6, 1, 0 }
   0xf   : > { %p779_p8 = pnand %p452_p5, %p142_p7  ;;  %s157_s26 = sshll.u32 %s704_s25, 4  ;;  %s783_s26 = int_to_ptr.vmem [resolvable:$true] %s157_s26 }
  0x10   : > { %s795_s28 = sadd.s32 1, %s702_s20   ;;  %s50_s29 = sadd.s32 1, %s698_s19 }
  0x11   : > { %s952_s24 = scalar_select %p779_p8, 1, 0 }
  0x12   : > { %p511_p9 = pneg %p779_p8  ;;  %s47_s30 = ssub.s32 %s702_s20, %s795_s28 }
  0x13   : > { %s574_s7 = scalar_lea.hbm %s944_s2, 1024 }
  0x14   : > { %p790_p11 = pnand %p511_p9, %p947_p1  ;;  %p575_p12 = scmp.ne.s32.totalorder %s944_s2, %s574_s7 }
  0x15   : > { %p581_p5 = scmp.lt.u32.totalorder %s574_s7, %s944_s2 }
  0x16   : > { %p576_p13 = pneg %p790_p11 }
  0x18   : > { %p577_p0 = pnand %p576_p13, %p575_p12 }
  0x1a   : > { %p578_p3 = pneg %p577_p0 }
  0x1c   : > { %p583_p7 = pnand %p581_p5, %p578_p3 }
  0x1e   : > { %586 = shalt.err (!%p583_p7)
}
  0x1f   : > { %s587_s12 = scalar_lea.vmem %s783_s26, 1024  ;;  %p595_p2 = scmp.lt.s32.totalorder %s783_s26, %s783_s26 }
  0x20   : > { %p588_p9 = scmp.ne.s32.totalorder %s783_s26, %s587_s12  ;;  %p596_p6 = scmp.lt.s32.totalorder %s587_s12, %s587_s12 }
  0x22   : > { %p590_p10 = pnand %p588_p9, %p576_p13  ;;  %p597_p4 = por %p596_p6, %p595_p2 }
  0x24   : > { %p591_p1 = pneg %p590_p10 }
  0x26   : > { %p598_p8 = pnand %p597_p4, %p591_p1 }
  0x28   : > { %601 = shalt.err (!%p598_p8)
}
  0x29   : > { %s705_s13 = smov 64   ;;  %s706_s14 = smov 4  }
  0x2a   : > { %514 = dma.hbm_to_vmem [thread:$0]  (!%p790_p11), %s944_s2, 1024, %s783_s26, [#allocation7], %s705_s13, %s705_s13, %s706_s14  }
  0x2b   : > { %p48_p2 = scmp.eq.s32.totalorder %s47_s30, 0  ;;  %p57_p1 = scmp.ne.s32.totalorder %s698_s19, %s694_s18 }
  0x2c   : > { %p58_p4 = scmp.eq.s32.totalorder %s702_s20, 0  ;;  %p524_p6 = scmp.lt.s32.totalorder %s702_s20, 2 }
  0x2d   : > { %s826_s21 = scalar_select %p48_p2, %s698_s19, %s50_s29  }
  0x2e   : > { %p59_p8 = por %p58_p4, %p57_p1  ;;  %p954_p10 = scmp.eq.s32.totalorder %s760_s0, 1 }
  0x2f   : > { %s174_s5 = sand.u32 1, %s698_s19   ;;  %s456_s6 = sshll.u32 %s702_s20, 7 }
  0x30   : > { %p830_p12 = por %p954_p10, %p57_p1  ;;  %s455_s7 = sshll.u32 %s174_s5, 3 }
  0x31   : > { %s839_s9 = scalar_lea.hbm %s943_s1, %s456_s6  ;;  %s178_s26 = scalar_lea.vmem [#allocation3], %s455_s7 }
  0x32   : > { %s185_s29 = sshll.u32 %s178_s26, 4  ;;  %p841_p11 = pnand %p524_p6, %p59_p8  ;;  %s845_s29 = int_to_ptr.vmem [resolvable:$true] %s185_s29 }
  0x33   : > { %s175_s10 = scalar_lea.sflag [#allocation4], %s174_s5  ;;  %s602_s11 = scalar_lea.hbm %s839_s9, 128 }
  0x34   : > { %p603_p13 = scmp.ne.s32.totalorder %s839_s9, %s602_s11  ;;  %p604_p0 = pneg %p841_p11 }
  0x35   : > { %s607_s14 = scalar_lea.hbm %s943_s1, 256  ;;  %p608_p7 = scmp.lt.u32.totalorder %s839_s9, %s943_s1 }
  0x36   : > { %p605_p3 = pnand %p604_p0, %p603_p13  ;;  %p609_p9 = scmp.lt.u32.totalorder %s607_s14, %s602_s11 }
  0x37   : > { %p611_p1 = scmp.lt.u32.totalorder %s602_s11, %s839_s9 }
  0x38   : > { %p606_p5 = pneg %p605_p3  ;;  %p610_p2 = por %p609_p9, %p608_p7 }
  0x3a   : > { %p612_p4 = por %p611_p1, %p610_p2 }
  0x3c   : > { %p613_p6 = pnand %p612_p4, %p606_p5 }
  0x3e   : > { %616 = shalt.err (!%p613_p6)
}
  0x3f   : > { %s617_s5 = scalar_lea.vmem %s845_s29, 128  ;;  %s707_s6 = smov [#allocation3]  }
  0x40   : > { %p618_p8 = scmp.ne.s32.totalorder %s845_s29, %s617_s5  ;;  %s622_s7 = sshll.u32 %s707_s6, 4  ;;  %s623_s7 = int_to_ptr.vmem [resolvable:$false] %s622_s7 }
  0x41   : > { %s624_s27 = scalar_lea.vmem %s623_s7, 256  ;;  %p625_p3 = scmp.lt.s32.totalorder %s845_s29, %s623_s7 }
  0x42   : > { %p620_p10 = pnand %p618_p8, %p604_p0  ;;  %p626_p7 = scmp.lt.s32.totalorder %s624_s27, %s617_s5 }
  0x44   : > { %p621_p13 = pneg %p620_p10  ;;  %p627_p9 = por %p626_p7, %p625_p3 }
  0x46   : > { %p628_p2 = pnand %p627_p9, %p621_p13 }
  0x48   : > { %631 = shalt.err (!%p628_p2)
}
  0x49   : > { %518 = dma.hbm_to_vmem [thread:$0]  (!%p841_p11), %s839_s9, 128, %s845_s29, %s175_s10  }
  0x4a   : > { %p957_p5 = scmp.ne.s32.totalorder %s952_s24, 0 }
  0x4b   : > { %s875_s8 = sand.u32 (!%p957_p5), 1, %s694_s18   ;;  %p958_p0 = scmp.ne.s32.totalorder (!%p957_p5), %s950_s22, 0 }
  0x4c   : > { %194 = sbr.rel (%p957_p5) target bundleno = 379 (0x17b), region = 36  ;;  %s458_s26 = sshll.u32 (!%p957_p5), %s875_s8, 3 }
  0x4d   : > { %s197_s11 = scalar_lea.sflag (!%p957_p5), [#allocation4], %s875_s8  ;;  %s200_s12 = scalar_lea.vmem (!%p957_p5), [#allocation3], %s458_s26 }
  0x53   : > { %677 = dma.done.wait (%p958_p0), %s197_s11, 128  }
  0x54   : > { %679 = vsyncadd (%p958_p0), %s197_s11, 4294967168  ;;  %p959_p11 = scmp.eq.s32.totalorder %s760_s0, 0 }
  0x56   : > { %681 = dma.done.wait (%p959_p11), [#allocation7], 1024   ;;  %p960_p1 = pmov %p959_p11 }
  0x57   : > { %v708_v0 = vmov 0.0   ;;  %vm709_vm0 = vmmov 0   ;;  %v564_v1 = vld [vmem:[#allocation6] sm:$0xff]   ;;  %v565_v2 = vld [vmem:[#allocation6 + $0x8] sm:$0xff]   ;;  %v566_v3 = vld [vmem:[#allocation6 + $0x10] sm:$0xff]   ;;  %s352_s9 = sld [smem:[#allocation2]] }
  0x58   : > { %683 = vsyncadd (%p960_p1), [#allocation7], 4294966272  ;;  %483 = vmatprep.subr.bf16.mxu0 %v708_v0  ;;  %499 = vmatprep.mubr.msk.bf16.mxu0 %vm709_vm0, %v708_v0  ;;  %v567_v4 = vld [vmem:[#allocation6 + $0x18] sm:$0xff]   ;;  %v568_v5 = vld [vmem:[#allocation6 + $0x20] sm:$0xff]   ;;  %s471_s29 = sshll.u32 %s760_s0, 7  ;;  %s228_s30 = scalar_lea.vmem [#allocation8], %s458_s26 }
  0x59   : > { %484 = vmatpush3.bf16.msra.mxu0 %v564_v1  ;;  %v569_v6 = vld [vmem:[#allocation6 + $0x28] sm:$0xff]   ;;  %v570_v7 = vld [vmem:[#allocation6 + $0x30] sm:$0xff]   ;;  %v571_v8 = vld [vmem:[#allocation6 + $0x38] sm:$0xff]   ;;  %s371_s10 = sshll.u32 %s228_s30, 4  ;;  %s898_s15 = scalar_lea.hbm %s946_s4, %s471_s29  ;;  %s900_s10 = int_to_ptr.vmem [resolvable:$true] %s371_s10 }
  0x5a   : > { %485 = vmatprep.subr.bf16.mxu0 %v708_v0  ;;  %v230_v9 = vld [vmem:[%s200_s12] sm:$0xff]  ;;  %s358_s16 = scalar_lea.sflag [#allocation5], %s875_s8  ;;  %s632_s5 = scalar_lea.vmem %s900_s10, 128 }
  0x5b   : > { %v231_v10 = vpack.c.bf16 %v230_v9, %v230_v9  ;;  %v461_v11 = vld [vmem:[%s945_s3] ss:$0 sm:$0xff]  ;;  %p633_p4 = scmp.ne.s32.totalorder %s900_s10, %s632_s5  ;;  %s710_s0 = smov [#allocation8]  }
  0x5c   : > { %s636_s6 = sshll.u32 %s710_s0, 4  ;;  %s637_s6 = int_to_ptr.vmem [resolvable:$false] %s636_s6 }
  0x5d   : > { %486 = vmatpush3.bf16.msra.mxu0 %v565_v2  ;;  %v353_v25 = vstv %s352_s9  ;;  %p634_p6 = pnand %p633_p4, %p830_p12  ;;  %s638_s7 = scalar_lea.vmem %s637_s6, 256 }
  0x5e   : > { %487 = vmatprep.subr.bf16.mxu0 %v708_v0  ;;  %p639_p10 = scmp.lt.s32.totalorder %s900_s10, %s637_s6  ;;  %p640_p13 = scmp.lt.s32.totalorder %s638_s7, %s632_s5 }
  0x5f   : > { %p635_p8 = pneg %p634_p6 }
  0x60   : > { %p641_p3 = por %p640_p13, %p639_p10 }
  0x61   : > { %488 = vmatpush3.bf16.msra.mxu0 %v566_v3 }
  0x62   : > { %489 = vmatprep.subr.bf16.mxu0 %v708_v0  ;;  %p642_p7 = pnand %p641_p3, %p635_p8 }
  0x65   : > { %490 = vmatpush3.bf16.msra.mxu0 %v567_v4 }
  0x66   : > { %491 = vmatprep.subr.bf16.mxu0 %v708_v0 }
  0x69   : > { %492 = vmatpush3.bf16.msra.mxu0 %v568_v5 }
  0x6a   : > { %493 = vmatprep.subr.bf16.mxu0 %v708_v0 }
  0x6d   : > { %494 = vmatpush3.bf16.msra.mxu0 %v569_v6 }
  0x6e   : > { %495 = vmatprep.subr.bf16.mxu0 %v708_v0 }
  0x71   : > { %496 = vmatpush3.bf16.msra.mxu0 %v570_v7 }
  0x72   : > { %497 = vmatprep.subr.bf16.mxu0 %v708_v0 }
  0x75   : > { %498 = vmatpush3.bf16.msra.mxu0 %v571_v8 }
  0x78   : > { %500 = vmatmul.mubr.bf16.vlgmr.msra.gmra.mrb[0].mxu0 %v231_v10 }
 0x14b   : > { %v337_v12 = vpop.f32.mrb[0].mxu0 }
 0x14c   : > { %v338_v13 = vadd.f32 %v461_v11, %v337_v12  ;;  %v501_v14 = vpop.f32.mrb[1].mxu0 }
 0x14d   : > { %v340_v15 = vpop.f32.mrb[2].mxu0 }
 0x14e   : > { %v343_v16 = vmul.f32 %v338_v13, %v338_v13  ;;  %v502_v17 = vpop.f32.mrb[3].mxu0 }
 0x150   : > { %v344_v18 = vmul.f32 %v343_v16, %v338_v13 }
 0x152   : > { %v345_v19 = vmul.f32 0.044715, %v344_v18 }
 0x154   : > { %v346_v20 = vadd.f32 %v345_v19, %v338_v13 }
 0x156   : > { %v347_v21 = vmul.f32 0.7978846, %v346_v20 }
 0x158   : > { %572 = vtanh.f32 %v347_v21 }
 0x162   : > { %v573_v22 = vpop.eup %572 }
 0x163   : > { %v349_v23 = vadd.f32 1.0, %v573_v22 }
 0x165   : > { %v350_v24 = vmul.f32 0.5, %v349_v23 }
 0x167   : > { %v351_v26 = vmul.f32 %v350_v24, %v338_v13 }
 0x169   : > { %v354_v27 = vmul.f32 %v353_v25, %v351_v26 }
 0x16b   : > { %v355_v28 = vadd.f32 %v354_v27, %v230_v9 }
 0x16d   : > { %356 = vst [vmem:[%s228_s30] sm:$0xff] %v355_v28 }
 0x16e   : > { %645 = shalt.err (!%p642_p7)
}
 0x16f   : > { %s646_s27 = scalar_lea.hbm %s898_s15, 128  ;;  %s650_s11 = scalar_lea.hbm %s946_s4, 256 }
 0x170   : > { %p647_p9 = scmp.ne.s32.totalorder %s898_s15, %s646_s27  ;;  %p651_p0 = scmp.lt.u32.totalorder %s898_s15, %s946_s4 }
 0x171   : > { %p652_p11 = scmp.lt.u32.totalorder %s650_s11, %s646_s27  ;;  %p654_p4 = scmp.lt.u32.totalorder %s646_s27, %s898_s15 }
 0x172   : > { %p648_p2 = pnand %p647_p9, %p830_p12 }
 0x173   : > { %p653_p1 = por %p652_p11, %p651_p0 }
 0x174   : > { %p649_p5 = pneg %p648_p2 }
 0x175   : > { %p655_p6 = por %p654_p4, %p653_p1 }
 0x177   : > { %p656_p8 = pnand %p655_p6, %p649_p5 }
 0x179   : > { %659 = shalt.err (!%p656_p8)
}
 0x17a   : > { %509 = dma.vmem_to_hbm [thread:$0]  (%p830_p12), %s900_s10, 128, %s898_s15, %s358_s16  }
 0x17b PF: > { %s383_s24 = sand.u32 1, %s690_s17   ;;  %p961_p10 = scmp.ne.s32.totalorder %s951_s23, 0 }
 0x17c   : > { %p962_p13 = scmp.ge.s32.totalorder %s702_s20, 2  ;;  %s384_s9 = scalar_lea.sflag [#allocation5], %s383_s24 }
 0x17e   : > { %p520_p3 = pnand %p962_p13, %p961_p10 }
 0x180   : > { %685 = dma.done.wait (!%p520_p3), %s384_s9, 128  }
 0x181   : > { %687 = vsyncadd (!%p520_p3), %s384_s9, 4294967168  ;;  %p19_p7 = scmp.ge.s32.totalorder %s795_s28, 4   ;;  %s963_s17 = smov %s694_s18 }
 0x182   : > { %s964_s18 = smov %s698_s19  ;;  %s965_s19 = smov %s826_s21 }
 0x183   : > { %s966_s20 = smov %s795_s28  ;;  %21 = sbr.rel (!%p19_p7) target bundleno = 8 (0x8), region = 85 }
 0x18a   :  { %389 = vsyncpa [#allocation4], 1 }
 0x18b   :  { %391 = vsyncpa [#allocation4 + $0x1], 1 }
 0x18c   :  { %392 = vsyncpa [#allocation7], 1 }
 0x18d   :  { %393 = vsyncpa [#allocation5], 1 }
 0x18e   :  { %395 = vsyncpa [#allocation5 + $0x1], 1 }

</bundles_post_ra>
